<compile_context>
chip_gen: v5e
topology: v5e:2x2
jax: 0.10.0
libtpu: 0.0.40
codegen_flags: <defaults>
</compile_context>

<pallas_src>
import jax
import jax.numpy as jnp
from jax.experimental import pallas as pl
from jax.experimental.pallas import tpu as pltpu

_LANE = 128


def mlp_readout_kernel(x_ref, w1t_ref, b1t_ref, w2t_ref, b2t_ref, w3t_ref,
                       b3t_ref, o_ref):
    x = x_ref[...]                                           # (tm, D) f32
    # Layer 0: h1ᵀ = W1ᵀ xᵀ — contract the feature axis of both operands
    # ((D1, D) · (tm, D)ᵀ -> (D1, tm)); standard A·Bᵀ (q·kᵀ) MXU pattern.
    h1 = jax.lax.dot_general(w1t_ref[...], x, (((1,), (1,)), ((), ())),
                             preferred_element_type=jnp.float32)
    h1 = jnp.maximum(h1 + b1t_ref[...], 0.0)                 # (D1, tm) lane-dense
    # Layer 1: h2ᵀ = W2ᵀ h1ᵀ
    h2 = jnp.dot(w2t_ref[...], h1, preferred_element_type=jnp.float32)
    h2 = jnp.maximum(h2 + b2t_ref[...], 0.0)                 # (D2, tm)
    # Output layer (no activation): yᵀ = W3ᵀ h2ᵀ
    y = jnp.dot(w3t_ref[...], h2, preferred_element_type=jnp.float32) + b3t_ref[...]
    o_ref[...] = y.astype(o_ref.dtype)                       # (O, tm) lane-dense store


def _round_up(x, m):
    return ((x + m - 1) // m) * m


def _cdiv(a, b):
    return (a + b - 1) // b


def _choose_tm(n, d, d1, d2, o, vmem_budget_bytes=24 << 20, cap=16384):
    """Pick the batch-tile size (rows per grid step) using lane-padded VMEM math."""
    per_row = (
        2 * _round_up(d, _LANE) * 4      # x tile, double-buffered, lane-padded f32
        + d * 4                          # possible internal transposed copy of x
        + (d1 + d2 + o) * 4              # lane-dense transposed intermediates
        + 2 * o * 4                      # output tile, double-buffered
    )
    tm_max = min(cap, max(_LANE, (vmem_budget_bytes // per_row) // _LANE * _LANE))
    n8 = _round_up(max(n, 1), 8)
    if n8 <= tm_max:
        if n8 >= 2048:
            # Two grid steps so a dual-TensorCore chip (v7x) can shard the
            # "parallel" batch axis; ~free on single-TC v5e/v6e.
            # TODO(synk): gate on the actual TensorCore count once TpuInfo
            # reliably exposes it; heuristic split is near-zero cost either way.
            return _round_up(_cdiv(n8, 2), _LANE)
        return n8                        # whole batch in one tile
    return tm_max                        # large batch: multiple of 128, capped


def mlp_readout(x, params, tm=None, vmem_limit_bytes=32 << 20):
    """x: (N, D) float32.  params: [(w1,b1),(w2,b2),(w3,b3)], w: (in,out), b: (1,out)."""
    (w1, b1), (w2, b2), (w3, b3) = params
    N, D = x.shape
    D1, D2, O = w1.shape[1], w2.shape[1], w3.shape[1]

    if tm is None:
        tm = _choose_tm(N, D, D1, D2, O)
    grid = _cdiv(N, tm)
    n_pad = grid * tm                    # output written in full lane-dense blocks

    # Tiny transposed weights / column biases: stay resident in VMEM.
    w1t, w2t, w3t = w1.T, w2.T, w3.T     # (D1,D), (D2,D1), (O,D2)
    b1t, b2t, b3t = b1.T, b2.T, b3.T     # (D1,1), (D2,1), (O,1)

    full = lambda a: pl.BlockSpec(a.shape, lambda i: (0, 0))

    out_t = pl.pallas_call(
        mlp_readout_kernel,
        out_shape=jax.ShapeDtypeStruct((O, n_pad), jnp.float32),
        grid_spec=pltpu.PrefetchScalarGridSpec(
            num_scalar_prefetch=0,
            grid=(grid,),
            in_specs=[
                pl.BlockSpec((tm, D), lambda i: (i, 0)),     # x tile over batch
                full(w1t), full(b1t),
                full(w2t), full(b2t),
                full(w3t), full(b3t),
            ],
            out_specs=pl.BlockSpec((O, tm), lambda i: (0, i)),
        ),
        compiler_params=pltpu.CompilerParams(
            dimension_semantics=("parallel",),
            vmem_limit_bytes=vmem_limit_bytes,
        ),
    )(x, w1t, b1t, w2t, b2t, w3t, b3t)

    # (O, n_pad) -> (N, O); columns >= N come from the ragged last block and are dropped.
    return out_t[:, :N].T


def init_mlp_readout_params(key, input_dim, output_dim, L=2):
    """Deterministic PyTorch-style init: U(-1/sqrt(fan_in), 1/sqrt(fan_in))."""
    dims_in = [input_dim // (2 ** l) for l in range(L)] + [input_dim // (2 ** L)]
    dims_out = [input_dim // (2 ** (l + 1)) for l in range(L)] + [output_dim]
    params = []
    for d_in, d_out in zip(dims_in, dims_out):
        key, kw, kb = jax.random.split(key, 3)
        bound = 1.0 / jnp.sqrt(jnp.float32(d_in))
        w = jax.random.uniform(kw, (d_in, d_out), jnp.float32, -bound, bound)
        b = jax.random.uniform(kb, (1, d_out), jnp.float32, -bound, bound)
        params.append((w, b))
    return params


def mlp_readout_ref(x, params):
    (w1, b1), (w2, b2), (w3, b3) = params
    h = jnp.maximum(x @ w1 + b1, 0.0)
    h = jnp.maximum(h @ w2 + b2, 0.0)
    return h @ w3 + b3


if __name__ == "__main__":
    key = jax.random.PRNGKey(0)
    input_dim, output_dim = 32, 4        # layers: 32 -> 16 -> 8 -> 4
    kx, kp = jax.random.split(key)
    params = init_mlp_readout_params(kp, input_dim, output_dim, L=2)

    # N=64: exact single block. N=100: ragged single block (rounded to 104 rows).
    # N=2500: two lane-dense (4, 1280) output blocks with a ragged last x block.
    for n in (64, 100, 2500):
        x = jax.random.normal(jax.random.fold_in(kx, n), (n, input_dim), jnp.float32)
        out = jax.block_until_ready(mlp_readout(x, params))
        ref = mlp_readout_ref(x, params)
        assert out.shape == (n, output_dim)
        # Kernel is f32 end-to-end; tolerance only covers MXU f32 pass rounding.
        assert jnp.allclose(out, ref, atol=1e-2, rtol=1e-2), f"mismatch at N={n}"

    print("KERNEL_OK")
</pallas_src>

<mosaic_0001>
module attributes {stable_mosaic.version = 11 : i64} {
  func.func @mlp_readout_kernel(%arg0: i32, %arg1: memref<64x32xf32, #tpu.memory_space<vmem>>, %arg2: memref<16x32xf32, #tpu.memory_space<vmem>>, %arg3: memref<16x1xf32, #tpu.memory_space<vmem>>, %arg4: memref<8x16xf32, #tpu.memory_space<vmem>>, %arg5: memref<8x1xf32, #tpu.memory_space<vmem>>, %arg6: memref<4x8xf32, #tpu.memory_space<vmem>>, %arg7: memref<4x1xf32, #tpu.memory_space<vmem>>, %arg8: memref<4x64xf32, #tpu.memory_space<vmem>>) attributes {dimension_semantics = [#tpu.dimension_semantics<parallel>], iteration_bounds = array<i64: 1>, scalar_prefetch = 0 : i64, scratch_operands = 0 : i64, tpu.core_type = #tpu.core_type<tc>, window_params = [{transform_indices = @transform_0, window_bounds = array<i64: 64, 32>}, {pipeline_mode = #tpu.pipeline_mode<synchronous>, transform_indices = @transform_1, window_bounds = array<i64: 16, 32>}, {pipeline_mode = #tpu.pipeline_mode<synchronous>, transform_indices = @transform_2, window_bounds = array<i64: 16, 1>}, {pipeline_mode = #tpu.pipeline_mode<synchronous>, transform_indices = @transform_3, window_bounds = array<i64: 8, 16>}, {pipeline_mode = #tpu.pipeline_mode<synchronous>, transform_indices = @transform_4, window_bounds = array<i64: 8, 1>}, {pipeline_mode = #tpu.pipeline_mode<synchronous>, transform_indices = @transform_5, window_bounds = array<i64: 4, 8>}, {pipeline_mode = #tpu.pipeline_mode<synchronous>, transform_indices = @transform_6, window_bounds = array<i64: 4, 1>}, {transform_indices = @transform_7, window_bounds = array<i64: 4, 64>}]} {
    %c0 = arith.constant 0 : index
    %c0_0 = arith.constant 0 : index
    %0 = vector.load %arg1[%c0, %c0_0] : memref<64x32xf32, #tpu.memory_space<vmem>>, vector<64x32xf32>
    %c0_1 = arith.constant 0 : index
    %c0_2 = arith.constant 0 : index
    %1 = vector.load %arg2[%c0_1, %c0_2] : memref<16x32xf32, #tpu.memory_space<vmem>>, vector<16x32xf32>
    %cst = arith.constant dense<0.000000e+00> : vector<16x64xf32>
    %2 = tpu.matmul %1, %0, %cst {dimension_numbers = #tpu.dot_dimension_numbers<[1], [1], [0], [0], [0, 0, 1, 0], [], []>} : vector<16x32xf32>, vector<64x32xf32>, vector<16x64xf32> -> vector<16x64xf32>
    %c0_3 = arith.constant 0 : index
    %c0_4 = arith.constant 0 : index
    %3 = vector.load %arg3[%c0_3, %c0_4] : memref<16x1xf32, #tpu.memory_space<vmem>>, vector<16x1xf32>
    %4 = vector.broadcast %3 : vector<16x1xf32> to vector<16x64xf32>
    %5 = arith.addf %2, %4 : vector<16x64xf32>
    %cst_5 = arith.constant 0.000000e+00 : f32
    %6 = vector.broadcast %cst_5 : f32 to vector<16x64xf32>
    %7 = arith.maximumf %5, %6 : vector<16x64xf32>
    %c0_6 = arith.constant 0 : index
    %c0_7 = arith.constant 0 : index
    %8 = vector.load %arg4[%c0_6, %c0_7] : memref<8x16xf32, #tpu.memory_space<vmem>>, vector<8x16xf32>
    %cst_8 = arith.constant dense<0.000000e+00> : vector<8x64xf32>
    %9 = tpu.matmul %8, %7, %cst_8 {dimension_numbers = #tpu.dot_dimension_numbers<[1], [0], [0], [1], [0, 0, 1, 1], [], []>} : vector<8x16xf32>, vector<16x64xf32>, vector<8x64xf32> -> vector<8x64xf32>
    %c0_9 = arith.constant 0 : index
    %c0_10 = arith.constant 0 : index
    %10 = vector.load %arg5[%c0_9, %c0_10] : memref<8x1xf32, #tpu.memory_space<vmem>>, vector<8x1xf32>
    %11 = vector.broadcast %10 : vector<8x1xf32> to vector<8x64xf32>
    %12 = arith.addf %9, %11 : vector<8x64xf32>
    %cst_11 = arith.constant 0.000000e+00 : f32
    %13 = vector.broadcast %cst_11 : f32 to vector<8x64xf32>
    %14 = arith.maximumf %12, %13 : vector<8x64xf32>
    %c0_12 = arith.constant 0 : index
    %c0_13 = arith.constant 0 : index
    %15 = vector.load %arg6[%c0_12, %c0_13] : memref<4x8xf32, #tpu.memory_space<vmem>>, vector<4x8xf32>
    %cst_14 = arith.constant dense<0.000000e+00> : vector<4x64xf32>
    %16 = tpu.matmul %15, %14, %cst_14 {dimension_numbers = #tpu.dot_dimension_numbers<[1], [0], [0], [1], [0, 0, 1, 1], [], []>} : vector<4x8xf32>, vector<8x64xf32>, vector<4x64xf32> -> vector<4x64xf32>
    %c0_15 = arith.constant 0 : index
    %c0_16 = arith.constant 0 : index
    %17 = vector.load %arg7[%c0_15, %c0_16] : memref<4x1xf32, #tpu.memory_space<vmem>>, vector<4x1xf32>
    %18 = vector.broadcast %17 : vector<4x1xf32> to vector<4x64xf32>
    %19 = arith.addf %16, %18 : vector<4x64xf32>
    %c0_17 = arith.constant 0 : index
    %c0_18 = arith.constant 0 : index
    %20 = vector.load %arg8[%c0_17, %c0_18] : memref<4x64xf32, #tpu.memory_space<vmem>>, vector<4x64xf32>
    tpu.vector_store %arg8[%c0_17, %c0_18], %19 {strides = array<i32>} : memref<4x64xf32, #tpu.memory_space<vmem>>, vector<4x64xf32>,
    return
  }
  func.func @transform_0(%arg0: i32) -> (i32, i32) {
    %c0_i32 = arith.constant 0 : i32
    %c0_i32_0 = arith.constant 0 : i32
    return %arg0, %c0_i32 : i32, i32
  }
  func.func @transform_1(%arg0: i32) -> (i32, i32) {
    %c0_i32 = arith.constant 0 : i32
    %c0_i32_0 = arith.constant 0 : i32
    %c0_i32_1 = arith.constant 0 : i32
    return %c0_i32, %c0_i32_0 : i32, i32
  }
  func.func @transform_2(%arg0: i32) -> (i32, i32) {
    %c0_i32 = arith.constant 0 : i32
    %c0_i32_0 = arith.constant 0 : i32
    %c0_i32_1 = arith.constant 0 : i32
    return %c0_i32, %c0_i32_0 : i32, i32
  }
  func.func @transform_3(%arg0: i32) -> (i32, i32) {
    %c0_i32 = arith.constant 0 : i32
    %c0_i32_0 = arith.constant 0 : i32
    %c0_i32_1 = arith.constant 0 : i32
    return %c0_i32, %c0_i32_0 : i32, i32
  }
  func.func @transform_4(%arg0: i32) -> (i32, i32) {
    %c0_i32 = arith.constant 0 : i32
    %c0_i32_0 = arith.constant 0 : i32
    %c0_i32_1 = arith.constant 0 : i32
    return %c0_i32, %c0_i32_0 : i32, i32
  }
  func.func @transform_5(%arg0: i32) -> (i32, i32) {
    %c0_i32 = arith.constant 0 : i32
    %c0_i32_0 = arith.constant 0 : i32
    %c0_i32_1 = arith.constant 0 : i32
    return %c0_i32, %c0_i32_0 : i32, i32
  }
  func.func @transform_6(%arg0: i32) -> (i32, i32) {
    %c0_i32 = arith.constant 0 : i32
    %c0_i32_0 = arith.constant 0 : i32
    %c0_i32_1 = arith.constant 0 : i32
    return %c0_i32, %c0_i32_0 : i32, i32
  }
  func.func @transform_7(%arg0: i32) -> (i32, i32) {
    %c0_i32 = arith.constant 0 : i32
    %c0_i32_0 = arith.constant 0 : i32
    return %c0_i32, %arg0 : i32, i32
  }
}

</mosaic_0001>

<bundles_post_ra>
// kernel: tpu_custom_call.1
= control target key start
LH: loop header
LB: loop body
LE: loop exit
PB: predicated region body
PF: predicated region fallthrough
CT: control target
= control target key end

     0   :  { %vm49_vm0 = vcmask 261120   ;;  %v236_v2 = vmov 0   ;;  %s347_s0 = inlined_call_operand.vmem [shape: f32[64,32], index: 0, kind: input, shape index: {}]   ;;  %s348_s1 = inlined_call_operand.vmem [shape: f32[16,32], index: 1, kind: input, shape index: {}]   ;;  %s349_s2 = inlined_call_operand.vmem [shape: f32[16,1], index: 2, kind: input, shape index: {}]   ;;  %s350_s3 = inlined_call_operand.vmem [shape: f32[8,16], index: 3, kind: input, shape index: {}]   ;;  %s351_s4 = inlined_call_operand.vmem [shape: f32[8,1], index: 4, kind: input, shape index: {}]   ;;  %s352_s5 = inlined_call_operand.vmem [shape: f32[4,8], index: 5, kind: input, shape index: {}]   ;;  %s353_s6 = inlined_call_operand.vmem [shape: f32[4,1], index: 6, kind: input, shape index: {}]   ;;  %s354_s7 = inlined_call_operand.hbm [shape: f32[4,64], index: 7, kind: output, shape index: {}]  }
   0x1   :  { %v34_v0 = vld [vmem:[%s347_s0 + $0x38] sm:$0xff]  ;;  %v33_v1 = vld [vmem:[%s347_s0 + $0x30] sm:$0xff]  ;;  %208 = vset.pattern.permute.xlu0 %v236_v2  ;;  %209 = vset.pattern.permute.xlu1 %v236_v2  ;;  %v38_v3 = vld [vmem:[%s349_s2 + $0x8] sm:$0xff] }
   0x2   :  { %186 = vmatpush.xpose.msk.msra.mxu0 %vm49_vm0, %v34_v0  ;;  %198 = vmatpush.xpose.msk.msra.mxu3 %vm49_vm0, %v34_v0 }
   0x3   :  { %46 = vperm.xlu0 %208, %v38_v3  }
   0x4   :  { %12 = vsyncpa [#allocation3], 0  ;;  %v32_v4 = vld [vmem:[%s347_s0 + $0x28] sm:$0xff]  ;;  %v37_v5 = vld [vmem:[%s349_s2] sm:$0xff]  ;;  %vm112_vm1 = vcmask 130048   ;;  %vm144_vm2 = vcmask 64512  }
   0x5   :  { %v31_v6 = vld [vmem:[%s347_s0 + $0x20] sm:$0xff]  ;;  %v30_v7 = vld [vmem:[%s347_s0 + $0x18] sm:$0xff]  ;;  %v29_v8 = vld [vmem:[%s347_s0 + $0x10] sm:$0xff]  ;;  %s237_s28 = smov [#allocation2]   ;;  %vm168_vm3 = vcmask 519168  }
   0x6   :  { %187 = vmatpush.xpose.msk.msra.mxu0 %vm49_vm0, %v33_v1  ;;  %199 = vmatpush.xpose.msk.msra.mxu3 %vm49_vm0, %v33_v1  ;;  %v28_v9 = vld [vmem:[%s347_s0 + $0x8] sm:$0xff]  ;;  %v27_v10 = vld [vmem:[%s347_s0] sm:$0xff]  ;;  %s175_s29 = sshll.u32 %s237_s28, 4  ;;  %s176_s29 = int_to_ptr.vmem [resolvable:$true] %s175_s29 }
   0x7   :  { %v35_v11 = vld [vmem:[%s348_s1] sm:$0xff]  ;;  %v36_v12 = vld [vmem:[%s348_s1 + $0x8] sm:$0xff] }
   0x8   :  { %v106_v13 = vld [vmem:[%s351_s4] sm:$0xff] }
   0x9   :  { %109 = vperm.xlu1 %209, %v106_v13   ;;  %v138_v14 = vld [vmem:[%s353_s6] sm:$0xf] }
   0xa   :  { %188 = vmatpush.xpose.msk.msra.mxu0 %vm49_vm0, %v32_v4  ;;  %200 = vmatpush.xpose.msk.msra.mxu3 %vm49_vm0, %v32_v4  ;;  %v105_v23 = vld [vmem:[%s350_s3] sm:$0xff]  ;;  %s177_s3 = sshll.u32 %s354_s7, 4  ;;  %s178_s3 = int_to_ptr.hbm [resolvable:$true] %s177_s3 }
   0xb   :  { %41 = vperm.xlu0 %208, %v37_v5   ;;  %v137_v28 = vld [vmem:[%s352_s5] sm:$0xf] }
   0xe   :  { %189 = vmatpush.xpose.msk.msra.mxu0 %vm49_vm0, %v31_v6  ;;  %201 = vmatpush.xpose.msk.msra.mxu3 %vm49_vm0, %v31_v6 }
  0x11   :  { %141 = vperm.xlu1 %209, %v138_v14  }
  0x12   :  { %190 = vmatpush.xpose.msk.msra.mxu0 %vm49_vm0, %v30_v7  ;;  %202 = vmatpush.xpose.msk.msra.mxu3 %vm49_vm0, %v30_v7 }
  0x16   :  { %191 = vmatpush.xpose.msk.msra.mxu0 %vm49_vm0, %v29_v8  ;;  %203 = vmatpush.xpose.msk.msra.mxu3 %vm49_vm0, %v29_v8 }
  0x1a   :  { %192 = vmatpush.xpose.msk.msra.mxu0 %vm49_vm0, %v28_v9  ;;  %204 = vmatpush.xpose.msk.msra.mxu3 %vm49_vm0, %v28_v9 }
  0x1e   :  { %193 = vmatpush.xpose.msk.msra.mxu0 %vm49_vm0, %v27_v10  ;;  %205 = vmatpush.xpose.msk.msra.mxu3 %vm49_vm0, %v27_v10 }
  0x21   :  { %194 = vmatmul.msk.f32.vlgmr.msra.gmra.mxu0 %vm49_vm0, %v35_v11  ;;  %195 = vmatmul.msk.f32.vlgmr.msra.gmra.mxu3 %vm49_vm0, %v36_v12 }
  0x75   :  { %v47_v15 = vpop.permute.xlu0 %46 }
  0x7b   :  { %v110_v24 = vpop.permute.xlu1 %109 }
  0x7d   :  { %v42_v16 = vpop.permute.xlu0 %41 }
  0x83   :  { %v142_v29 = vpop.permute.xlu1 %141 }
  0x9e   :  { %v97_v17 = vpop.f32.mrf.mxu0 }
  0x9f   :  { %v98_v19 = vadd.f32 %v97_v17, %v42_v16 }
  0xa1   :  { %v103_v22 = vmax.f32 %v98_v19, 0.0 }
  0xa4   :  { %v100_v18 = vpop.f32.mrf.mxu3 }
  0xa5   :  { %v101_v20 = vadd.f32 %v100_v18, %v47_v15 }
  0xa7   :  { %v104_v21 = vmax.f32 %v101_v20, 0.0 }
  0xa9   :  { %130 = vmatpush.msra.mxu1 %v104_v21 }
  0xab   :  { %131 = vmatpush.msra.mxu1 %v103_v22 }
  0xac   :  { %196 = vmatmul.msk.f32.vlgmr.msra.gmra.mxu1 %vm112_vm1, %v105_v23 }
 0x129   :  { %v133_v25 = vpop.f32.mrf.mxu1 }
 0x12a   :  { %v134_v26 = vadd.f32 %v133_v25, %v110_v24 }
 0x12c   :  { %v136_v27 = vmax.f32 %v134_v26, 0.0 }
 0x12e   :  { %163 = vmatpush.msra.mxu2 %v136_v27 }
 0x12f   :  { %197 = vmatmul.msk.f32.vlgmr.msra.gmra.mxu2 %vm144_vm2, %v137_v28 }
 0x1b2   :  { %v165_v30 = vpop.f32.mrf.mxu2 }
 0x1b3   :  { %v166_v31 = vadd.f32 %v165_v30, %v142_v29 }
 0x1b5   :  { %169 = vst.msk [vmem:[#allocation2] sm:$0xf] %vm168_vm3, %v166_v31 }
 0x1b6   :  { %180 = dma.vmem_to_hbm [thread:$0]  %s176_s29, 64, %s178_s3, [#allocation3]  }
 0x1b7   :  { %234 = dma.done.wait [#allocation3], 64  }
 0x1b8   :  { %235 = vsyncadd [#allocation3], 4294967232 }
 0x1b9   :  { %185 = vsyncpa [#allocation3], 1 }

</bundles_post_ra>
